<compile_context>
chip_gen: v7x
topology: tpu7x:2x2x1
jax: 0.10.0
libtpu: 0.0.40
codegen_flags: <defaults>
</compile_context>

<pallas_src>
import functools
import math

import jax
import jax.numpy as jnp
from jax import lax
from jax.experimental import pallas as pl
from jax.experimental.pallas import tpu as pltpu


def _round_up(a, b):
    return (a + b - 1) // b * b


def _vmem_capacity_bytes():
    try:
        return int(pltpu.get_tpu_info().vmem_capacity_bytes)
    except Exception:
        return 64 * 1024 * 1024  # conservative fallback (v7x per-core VMEM)


def _mlp_kernel(x_ref, w1_ref, b1_ref, w2_ref, b2_ref, o_ref, acc_ref, *,
                approximate_gelu):
    k = pl.program_id(2)

    @pl.when(k == 0)
    def _init():
        acc_ref[...] = jnp.zeros_like(acc_ref)

    # First linear on this inter_dim slice: (tile_n, in) @ (in, tile_k) + b1[k]
    h = jnp.dot(x_ref[...], w1_ref[...], preferred_element_type=jnp.float32)
    h = h + b1_ref[...]  # (1, tile_k) f32 -> broadcasts over rows

    if approximate_gelu:
        # tanh-approx GELU: tanh runs on the EUP slot (hidden under MXU/DMA).
        c = math.sqrt(2.0 / math.pi)
        h = 0.5 * h * (1.0 + jnp.tanh(c * (h + 0.044715 * (h * h * h))))
    else:
        # Exact erf GELU, matching torch.nn.GELU() default.
        h = 0.5 * h * (1.0 + lax.erf(h * (1.0 / math.sqrt(2.0))))

    # Second linear, accumulated over inter_dim tiles in f32.
    acc_ref[...] += jnp.dot(h.astype(w2_ref.dtype), w2_ref[...],
                            preferred_element_type=jnp.float32)

    @pl.when(k == pl.num_programs(2) - 1)
    def _finalize():
        o_ref[...] = (acc_ref[...] + b2_ref[...]).astype(o_ref.dtype)


def mlp_pallas(x, w1, b1, w2, b2, *, tile_n=None, tile_k=None, tile_out=None,
               compute_dtype=None, approximate_gelu=None):
    """x: (..., in_dim); w1: (in_dim, inter_dim); b1: (inter_dim,);
    w2: (inter_dim, out_dim); b2: (out_dim,). Returns (..., out_dim)."""
    in_dim = x.shape[-1]
    inter_dim = w1.shape[1]
    out_dim = w2.shape[1]
    out_dtype = x.dtype
    lead_shape = x.shape[:-1]

    # bf16 dot operands by default (MXU-native on v5e/v6e/v7x); f32 accumulate.
    compute_dtype = jnp.dtype(jnp.bfloat16 if compute_dtype is None
                              else compute_dtype)
    if approximate_gelu is None:
        approximate_gelu = compute_dtype != jnp.dtype(jnp.float32)

    itemsize = compute_dtype.itemsize
    out_itemsize = jnp.dtype(out_dtype).itemsize
    pack = {1: 32, 2: 16, 4: 8}.get(itemsize, 8)  # sublane pack for operands

    x2 = x.reshape(-1, in_dim)
    N = x2.shape[0]
    n_cap = _round_up(max(N, 1), pack)        # tiny problems -> single tile
    k_full = _round_up(inter_dim, 128)
    out_full = _round_up(out_dim, 128)

    capacity = _vmem_capacity_bytes()
    budget = int(0.78 * capacity)             # ~100 MiB v5e/v6e, ~50 MiB v7x

    # --- tile_n: default targets the streaming-weights roofline crossover ----
    if tile_n is None:
        tile_n = 768 if capacity >= 96 * 1024 * 1024 else 512
    tile_n = max(pack, min(_round_up(tile_n, pack), n_cap))

    # --- tile_out: keep whole unless out_dim is large --------------------------
    if tile_out is None:
        tile_out = out_full if out_full <= 2048 else 1024
    else:
        tile_out = min(_round_up(tile_out, 128), out_full)

    def vmem_need(tn, tk, to):
        # double-buffered inputs/outputs + f32 accumulator scratch
        return (2 * tn * in_dim * itemsize          # x tile
                + 2 * in_dim * tk * itemsize        # w1 slice
                + 2 * 8 * tk * 4                    # b1 slice (8-sublane pad)
                + 2 * tk * to * itemsize            # w2 slice
                + 2 * 8 * to * 4                    # b2 slice
                + 2 * tn * to * out_itemsize        # out tile
                + tn * to * 4)                      # acc scratch

    # --- tile_k: try full-residency first, else stream with fitted tiles ------
    if tile_k is None:
        tile_k = k_full
        if vmem_need(tile_n, tile_k, tile_out) > budget:
            tile_k = min(512, k_full)
    else:
        tile_k = max(128, min(_round_up(tile_k, 128), k_full))

    while vmem_need(tile_n, tile_k, tile_out) > budget and tile_k > 128:
        tile_k = max(128, _round_up(tile_k // 2, 128))
    while vmem_need(tile_n, tile_k, tile_out) > budget and tile_n > pack:
        tile_n = max(pack, _round_up(tile_n // 2, pack))
    while vmem_need(tile_n, tile_k, tile_out) > budget and tile_out > 128:
        tile_out = max(128, _round_up(tile_out // 2, 128))

    n_pad = _round_up(max(N, 1), tile_n)
    k_pad = _round_up(inter_dim, tile_k)
    out_pad = _round_up(out_dim, tile_out)

    # Pad + cast (dot operands in compute_dtype; biases stay f32).
    x_p = jnp.pad(x2, ((0, n_pad - N), (0, 0))).astype(compute_dtype)
    w1_p = jnp.pad(w1, ((0, 0), (0, k_pad - inter_dim))).astype(compute_dtype)
    b1_p = jnp.pad(b1, ((0, k_pad - inter_dim),)).reshape(1, k_pad).astype(jnp.float32)
    w2_p = jnp.pad(w2, ((0, k_pad - inter_dim), (0, out_pad - out_dim))).astype(compute_dtype)
    b2_p = jnp.pad(b2, ((0, out_pad - out_dim),)).reshape(1, out_pad).astype(jnp.float32)

    n_i, n_j, n_k = n_pad // tile_n, out_pad // tile_out, k_pad // tile_k
    grid = (n_i, n_j, n_k)

    # Advisory cost: count streamed weight re-reads; transcendentals only on
    # the tanh (EUP) path.
    w1_bytes = in_dim * k_pad * itemsize
    w2_bytes = k_pad * out_pad * itemsize
    w1_reads = 1 if n_k == 1 else n_i * n_j
    w2_reads = 1 if (n_k == 1 and n_j == 1) else n_i
    cost = pl.CostEstimate(
        flops=2 * N * in_dim * inter_dim + 2 * N * inter_dim * out_dim,
        transcendentals=(N * inter_dim) if approximate_gelu else 0,
        bytes_accessed=int(n_pad * in_dim * itemsize
                           + w1_reads * w1_bytes + w2_reads * w2_bytes
                           + 8 * k_pad * 4 + 8 * out_pad * 4
                           + n_pad * out_pad * out_itemsize),
    )

    kernel = functools.partial(_mlp_kernel, approximate_gelu=bool(approximate_gelu))

    out_padded = pl.pallas_call(
        kernel,
        out_shape=jax.ShapeDtypeStruct((n_pad, out_pad), out_dtype),
        grid_spec=pltpu.PrefetchScalarGridSpec(
            num_scalar_prefetch=0,
            grid=grid,
            in_specs=[
                pl.BlockSpec((tile_n, in_dim), lambda i, j, k: (i, 0)),     # x tile
                pl.BlockSpec((in_dim, tile_k), lambda i, j, k: (0, k)),     # w1 slice
                pl.BlockSpec((1, tile_k), lambda i, j, k: (0, k)),          # b1 slice
                pl.BlockSpec((tile_k, tile_out), lambda i, j, k: (k, j)),   # w2 slice
                pl.BlockSpec((1, tile_out), lambda i, j, k: (0, j)),        # b2 slice
            ],
            out_specs=pl.BlockSpec((tile_n, tile_out), lambda i, j, k: (i, j)),
            scratch_shapes=[pltpu.VMEM((tile_n, tile_out), jnp.float32)],
        ),
        compiler_params=pltpu.CompilerParams(
            dimension_semantics=("parallel", "parallel", "arbitrary"),
            vmem_limit_bytes=int(budget),
        ),
        cost_estimate=cost,
    )(x_p, w1_p, b1_p, w2_p, b2_p)

    out = out_padded[:N, :out_dim]
    return out.reshape(lead_shape + (out_dim,))


def mlp_reference(x, w1, b1, w2, b2):
    h = jnp.dot(x, w1, precision=lax.Precision.HIGHEST) + b1
    h = 0.5 * h * (1.0 + lax.erf(h / math.sqrt(2.0)))
    return jnp.dot(h, w2, precision=lax.Precision.HIGHEST) + b2


if __name__ == "__main__":
    # Shapes consistent with the module: MLP(in_dim=32, inter_dim=256, out_dim=16).
    N, in_dim, inter_dim, out_dim = 48, 32, 256, 16

    key = jax.random.PRNGKey(0)
    kx, kw1, kb1, kw2, kb2 = jax.random.split(key, 5)

    x = jax.random.normal(kx, (N, in_dim), dtype=jnp.float32)

    # Deterministic init mimicking nn.Linear's uniform(-1/sqrt(fan_in), ...).
    lim1 = 1.0 / math.sqrt(in_dim)
    lim2 = 1.0 / math.sqrt(inter_dim)
    w1 = jax.random.uniform(kw1, (in_dim, inter_dim), jnp.float32, -lim1, lim1)
    b1 = jax.random.uniform(kb1, (inter_dim,), jnp.float32, -lim1, lim1)
    w2 = jax.random.uniform(kw2, (inter_dim, out_dim), jnp.float32, -lim2, lim2)
    b2 = jax.random.uniform(kb2, (out_dim,), jnp.float32, -lim2, lim2)

    ref = mlp_reference(x, w1, b1, w2, b2)

    # 1) Exact-parity config: f32 operands, exact erf GELU, small tiles so the
    #    grid is (3, 1, 2) -> exercises batch pipelining + k reduction + padding.
    out = mlp_pallas(x, w1, b1, w2, b2, tile_n=16, tile_k=128,
                     compute_dtype=jnp.float32, approximate_gelu=False)
    out = jax.block_until_ready(out)
    assert out.shape == (N, out_dim)
    assert jnp.allclose(out, ref, atol=1e-2, rtol=1e-2), \
        float(jnp.max(jnp.abs(out - ref)))

    # 2) Performance defaults: bf16 dot operands, tanh-approx GELU, tiles chosen
    #    from the VMEM budget (weights resident, grid collapses to (1,1,1)).
    out_fast = mlp_pallas(x, w1, b1, w2, b2)
    out_fast = jax.block_until_ready(out_fast)
    assert out_fast.shape == (N, out_dim)
    assert jnp.allclose(out_fast, ref, atol=3e-2, rtol=3e-2), \
        float(jnp.max(jnp.abs(out_fast - ref)))

    # 3) out_dim tiling path: grid (2, 2, 2) with a (tile_n, tile_out) accumulator.
    N3, out_dim3 = 32, 256
    x3 = jax.random.normal(kx, (N3, in_dim), dtype=jnp.float32)
    w2b = jax.random.uniform(kw2, (inter_dim, out_dim3), jnp.float32, -lim2, lim2)
    b2b = jax.random.uniform(kb2, (out_dim3,), jnp.float32, -lim2, lim2)
    ref3 = mlp_reference(x3, w1, b1, w2b, b2b)
    out3 = mlp_pallas(x3, w1, b1, w2b, b2b, tile_n=16, tile_k=128, tile_out=128,
                      compute_dtype=jnp.float32, approximate_gelu=False)
    out3 = jax.block_until_ready(out3)
    assert out3.shape == (N3, out_dim3)
    assert jnp.allclose(out3, ref3, atol=1e-2, rtol=1e-2), \
        float(jnp.max(jnp.abs(out3 - ref3)))

    print("KERNEL_OK")
</pallas_src>

<mosaic_0001>
module attributes {stable_mosaic.version = 11 : i64} {
  func.func @_mlp_kernel(%arg0: i32, %arg1: i32, %arg2: i32, %arg3: memref<16x32xf32, #tpu.memory_space<vmem>>, %arg4: memref<32x128xf32, #tpu.memory_space<vmem>>, %arg5: memref<1x128xf32, #tpu.memory_space<vmem>>, %arg6: memref<128x128xf32, #tpu.memory_space<vmem>>, %arg7: memref<1x128xf32, #tpu.memory_space<vmem>>, %arg8: memref<16x128xf32, #tpu.memory_space<vmem>>, %arg9: memref<16x128xf32, #tpu.memory_space<vmem>>) attributes {dimension_semantics = [#tpu.dimension_semantics<parallel>, #tpu.dimension_semantics<parallel>, #tpu.dimension_semantics<arbitrary>], iteration_bounds = array<i64: 3, 1, 2>, scalar_prefetch = 0 : i64, scratch_operands = 1 : i64, tpu.core_type = #tpu.core_type<tc>, window_params = [{transform_indices = @transform_0, window_bounds = array<i64: 16, 32>}, {transform_indices = @transform_1, window_bounds = array<i64: 32, 128>}, {transform_indices = @transform_2, window_bounds = array<i64: 1, 128>}, {transform_indices = @transform_3, window_bounds = array<i64: 128, 128>}, {transform_indices = @transform_4, window_bounds = array<i64: 1, 128>}, {transform_indices = @transform_5, window_bounds = array<i64: 16, 128>}]} {
    %c0_i32 = arith.constant 0 : i32
    %0 = arith.cmpi eq, %arg2, %c0_i32 : i32
    %1 = arith.extui %0 : i1 to i32
    %c0_i32_0 = arith.constant 0 : i32
    %2 = arith.cmpi ne, %1, %c0_i32_0 : i32
    scf.if %2 {
      %cst_17 = arith.constant 0.000000e+00 : f32
      %25 = vector.broadcast %cst_17 : f32 to vector<16x128xf32>
      %c0_18 = arith.constant 0 : index
      %c0_19 = arith.constant 0 : index
      %26 = vector.load %arg9[%c0_18, %c0_19] : memref<16x128xf32, #tpu.memory_space<vmem>>, vector<16x128xf32>
      tpu.vector_store %arg9[%c0_18, %c0_19], %25 {strides = array<i32>} : memref<16x128xf32, #tpu.memory_space<vmem>>, vector<16x128xf32>,
    } else {
    }
    %c0 = arith.constant 0 : index
    %c0_1 = arith.constant 0 : index
    %3 = vector.load %arg3[%c0, %c0_1] : memref<16x32xf32, #tpu.memory_space<vmem>>, vector<16x32xf32>
    %c0_2 = arith.constant 0 : index
    %c0_3 = arith.constant 0 : index
    %4 = vector.load %arg4[%c0_2, %c0_3] : memref<32x128xf32, #tpu.memory_space<vmem>>, vector<32x128xf32>
    %cst = arith.constant dense<0.000000e+00> : vector<16x128xf32>
    %5 = tpu.matmul %3, %4, %cst {dimension_numbers = #tpu.dot_dimension_numbers<[1], [0], [0], [1], [0, 0, 1, 1], [], []>} : vector<16x32xf32>, vector<32x128xf32>, vector<16x128xf32> -> vector<16x128xf32>
    %c0_4 = arith.constant 0 : index
    %c0_5 = arith.constant 0 : index
    %6 = vector.load %arg5[%c0_4, %c0_5] : memref<1x128xf32, #tpu.memory_space<vmem>>, vector<1x128xf32>
    %7 = vector.broadcast %6 : vector<1x128xf32> to vector<16x128xf32>
    %8 = arith.addf %5, %7 : vector<16x128xf32>
    %cst_6 = arith.constant 5.000000e-01 : f32
    %9 = vector.broadcast %cst_6 : f32 to vector<16x128xf32>
    %10 = arith.mulf %9, %8 : vector<16x128xf32>
    %cst_7 = arith.constant 0.707106769 : f32
    %11 = vector.broadcast %cst_7 : f32 to vector<16x128xf32>
    %12 = arith.mulf %8, %11 : vector<16x128xf32>
    %13 = math.erf %12 : vector<16x128xf32>
    %cst_8 = arith.constant 1.000000e+00 : f32
    %14 = vector.broadcast %cst_8 : f32 to vector<16x128xf32>
    %15 = arith.addf %14, %13 : vector<16x128xf32>
    %16 = arith.mulf %10, %15 : vector<16x128xf32>
    %c0_9 = arith.constant 0 : index
    %c0_10 = arith.constant 0 : index
    %17 = vector.load %arg9[%c0_9, %c0_10] : memref<16x128xf32, #tpu.memory_space<vmem>>, vector<16x128xf32>
    %c0_11 = arith.constant 0 : index
    %c0_12 = arith.constant 0 : index
    %18 = vector.load %arg6[%c0_11, %c0_12] : memref<128x128xf32, #tpu.memory_space<vmem>>, vector<128x128xf32>
    %cst_13 = arith.constant dense<0.000000e+00> : vector<16x128xf32>
    %19 = tpu.matmul %16, %18, %cst_13 {dimension_numbers = #tpu.dot_dimension_numbers<[1], [0], [0], [1], [0, 0, 1, 1], [], []>} : vector<16x128xf32>, vector<128x128xf32>, vector<16x128xf32> -> vector<16x128xf32>
    %20 = arith.addf %17, %19 : vector<16x128xf32>
    %c0_14 = arith.constant 0 : index
    %c0_15 = arith.constant 0 : index
    %21 = vector.load %arg9[%c0_14, %c0_15] : memref<16x128xf32, #tpu.memory_space<vmem>>, vector<16x128xf32>
    tpu.vector_store %arg9[%c0_14, %c0_15], %20 {strides = array<i32>} : memref<16x128xf32, #tpu.memory_space<vmem>>, vector<16x128xf32>,
    %c1_i32 = arith.constant 1 : i32
    %22 = arith.cmpi eq, %arg2, %c1_i32 : i32
    %23 = arith.extui %22 : i1 to i32
    %c0_i32_16 = arith.constant 0 : i32
    %24 = arith.cmpi ne, %23, %c0_i32_16 : i32
    scf.if %24 {
      %c0_17 = arith.constant 0 : index
      %c0_18 = arith.constant 0 : index
      %25 = vector.load %arg9[%c0_17, %c0_18] : memref<16x128xf32, #tpu.memory_space<vmem>>, vector<16x128xf32>
      %c0_19 = arith.constant 0 : index
      %c0_20 = arith.constant 0 : index
      %26 = vector.load %arg7[%c0_19, %c0_20] : memref<1x128xf32, #tpu.memory_space<vmem>>, vector<1x128xf32>
      %27 = vector.broadcast %26 : vector<1x128xf32> to vector<16x128xf32>
      %28 = arith.addf %25, %27 : vector<16x128xf32>
      %c0_21 = arith.constant 0 : index
      %c0_22 = arith.constant 0 : index
      %29 = vector.load %arg8[%c0_21, %c0_22] : memref<16x128xf32, #tpu.memory_space<vmem>>, vector<16x128xf32>
      tpu.vector_store %arg8[%c0_21, %c0_22], %28 {strides = array<i32>} : memref<16x128xf32, #tpu.memory_space<vmem>>, vector<16x128xf32>,
    } else {
    }
    return
  }
  func.func @transform_0(%arg0: i32, %arg1: i32, %arg2: i32) -> (i32, i32) {
    %c0_i32 = arith.constant 0 : i32
    %c0_i32_0 = arith.constant 0 : i32
    return %arg0, %c0_i32 : i32, i32
  }
  func.func @transform_1(%arg0: i32, %arg1: i32, %arg2: i32) -> (i32, i32) {
    %c0_i32 = arith.constant 0 : i32
    %c0_i32_0 = arith.constant 0 : i32
    return %c0_i32, %arg2 : i32, i32
  }
  func.func @transform_2(%arg0: i32, %arg1: i32, %arg2: i32) -> (i32, i32) {
    %c0_i32 = arith.constant 0 : i32
    %c0_i32_0 = arith.constant 0 : i32
    return %c0_i32, %arg2 : i32, i32
  }
  func.func @transform_3(%arg0: i32, %arg1: i32, %arg2: i32) -> (i32, i32) {
    %c0_i32 = arith.constant 0 : i32
    return %arg2, %arg1 : i32, i32
  }
  func.func @transform_4(%arg0: i32, %arg1: i32, %arg2: i32) -> (i32, i32) {
    %c0_i32 = arith.constant 0 : i32
    %c0_i32_0 = arith.constant 0 : i32
    return %c0_i32, %arg1 : i32, i32
  }
  func.func @transform_5(%arg0: i32, %arg1: i32, %arg2: i32) -> (i32, i32) {
    %c0_i32 = arith.constant 0 : i32
    return %arg0, %arg1 : i32, i32
  }
}

</mosaic_0001>

<bundles_post_ra>
// kernel: tpu_custom_call.1
= control target key start
LH: loop header
LB: loop body
LE: loop exit
PB: predicated region body
PF: predicated region fallthrough
CT: control target
= control target key end

     0   :  { %s1472_s0 = inlined_call_operand.vmem [shape: f32[48,32], index: 0, kind: input, shape index: {}]   ;;  %s1473_s1 = inlined_call_operand.vmem [shape: f32[32,256], index: 1, kind: input, shape index: {}]   ;;  %s1474_s2 = inlined_call_operand.vmem [shape: f32[1,256], index: 2, kind: input, shape index: {}]   ;;  %s1475_s3 = inlined_call_operand.hbm [shape: f32[256,128], index: 3, kind: input, shape index: {}]   ;;  %s1476_s4 = inlined_call_operand.vmem [shape: f32[1,128], index: 4, kind: input, shape index: {}]   ;;  %s1477_s5 = inlined_call_operand.hbm [shape: f32[48,128], index: 5, kind: output, shape index: {}]  }
   0x1   :  { %1482 = sst [smem:[#allocation14_spill]] %s1473_s1 }
   0x2   :  { %10 = vsyncpa [#allocation5], 0 }
   0x3   :  { %12 = vsyncpa [#allocation5 + $0x1], 0 }
   0x4   :  { %13 = vsyncpa [#allocation6], 0 }
   0x5   :  { %15 = vsyncpa [#allocation6 + $0x1], 0  ;;  %s1201_s18 = smov 0   ;;  %s1203_s19 = smov 0  }
   0x6   :  { %s1205_s20 = smov 0   ;;  %s1207_s21 = smov 0  }
   0x7   :  { %s1209_s22 = smov 0   ;;  %s1211_s23 = smov 0  }
   0x8   :  { %s1213_s24 = smov 0   ;;  %s1215_s25 = smov 0  }
   0x9   :  { %s1217_s26 = smov 0   ;;  %s1219_s27 = smov 0  }
   0xa   :  { %s1221_s28 = smov 0  }
   0xb LB: > { %1483 = sst [smem:[#allocation10_spill]] %s1158_s27  ;;  %s767_s29 = sadd.s32 4294967295, %s1162_s28   ;;  %s1162_s28 = sphi %s1221_s28, %s21_s28   ;;  %s1158_s27 = sphi %s1219_s27, %s1497_s27   ;;  %s1154_s26 = sphi %s1217_s26, %s1505_s26   ;;  %s1150_s25 = sphi %s1215_s25, %s1495_s25   ;;  %s1146_s24 = sphi %s1213_s24, %s1504_s24   ;;  %s1142_s23 = sphi %s1211_s23, %s1503_s23   ;;  %s1138_s22 = sphi %s1209_s22, %s1502_s22   ;;  %s1134_s21 = sphi %s1207_s21, %s1501_s21   ;;  %s1130_s20 = sphi %s1205_s20, %s1500_s20   ;;  %s1126_s19 = sphi %s1203_s19, %s1499_s19   ;;  %s1122_s18 = sphi %s1201_s18, %s1498_s18  }
   0xc   : > { %s768_s30 = sadd.s32 4294967294, %s1162_s28   ;;  %s33_s6 = sadd.s32 1, %s1154_s26 }
   0xd   : > { %s40_s7 = sadd.s32 1, %s1158_s27  ;;  %p34_p0 = scmp.ge.s32.totalorder %s33_s6, 2 }
   0xe   : > { %s73_s8 = sadd.s32 1, %s1142_s23  ;;  %p80_p1 = scmp.ne.s32.totalorder %s1142_s23, %s1138_s22 }
   0xf   : > { %p81_p2 = scmp.eq.s32.totalorder %s1162_s28, 0  ;;  %s1507_s6 = smov (%p34_p0, %s33_s6), 0 }
  0x10   : > { %1484 = sst [smem:[#allocation11_spill]] %s1507_s6  ;;  %s1509_s7 = smov (!%p34_p0, %s40_s7), %s1158_s27 }
  0x11   : > { %s70_s9 = ssub.s32 %s1154_s26, %s1507_s6  ;;  %p1267_p3 = por %p81_p2, %p80_p1 }
  0x12   : > { %p42_p4 = scmp.ge.s32.totalorder %s1509_s7, 3  ;;  %p71_p5 = scmp.eq.s32.totalorder %s70_s9, 0 }
  0x13   : > { %p140_p6 = scmp.ne.s32.totalorder %s1138_s22, %s1134_s21  ;;  %p141_p7 = scmp.eq.s32.totalorder %s767_s29, 0 }
  0x14   : > { %s1511_s7 = smov (%p42_p4, %s1509_s7), 0  ;;  %s181_s14 = sadd.s32 1, %s1130_s20 }
  0x15   : > { %1486 = sst [smem:[#allocation12_spill]] %s1511_s7  ;;  %p1277_p8 = por %p141_p7, %p140_p6 }
  0x16   : > { %s1275_s11 = scalar_select %p71_p5, %s1142_s23, %s73_s8  }
  0x17   : > { %s176_s13 = ssub.s32 %s1158_s27, %s1511_s7  ;;  %p191_p10 = scmp.ne.s32.totalorder %s1130_s20, %s1126_s19 }
  0x18   : > { %1487 = sst [smem:[#allocation13_spill]] %s1275_s11  ;;  %p179_p9 = scmp.eq.s32.totalorder %s176_s13, 0 }
  0x19   : > { %p192_p11 = scmp.eq.s32.totalorder %s767_s29, 5  ;;  %p197_p13 = scmp.ne.s32.totalorder %s1126_s19, %s1122_s18 }
  0x1a   : > { %s1287_s15 = scalar_select %p179_p9, %s1130_s20, %s181_s14  }
  0x1b   : > { %p1289_p12 = por %p192_p11, %p191_p10  ;;  %p198_p0 = scmp.eq.s32.totalorder %s768_s30, 5 }
  0x1c   : > { %p771_p2 = scmp.ge.s32.totalorder %s1162_s28, 6 }
  0x1d   : > { %s1489_s16 = scalar_select %p1289_p12, 1, 0 }
  0x1e   : > { %p1295_p1 = por %p198_p0, %p197_p13  ;;  %220 = sbr.rel (%p771_p2) target bundleno = 75 (0x4b), region = 20 }
  0x20   : > { %s1490_s17 = scalar_select %p1295_p1, 1, 0 }
  0x25   : > { %232 = sbr.rel (!%p1267_p3) target bundleno = 49 (0x31), region = 28  ;;  %s234_s21 = sand.u32 (%p1267_p3), 1, %s1142_s23  }
  0x26   : > { %s773_s29 = sshll.u32 (%p1267_p3), %s1154_s26, 3  ;;  %s772_s8 = sshll.u32 (%p1267_p3), %s234_s21, 5 }
  0x27   : > { %s1491_s1 = sld [smem:[#allocation14_spill]] (%p1267_p3)  ;;  %s236_s30 = scalar_lea.vmem (%p1267_p3), [#allocation3], %s772_s8 }
  0x2d   : > { %s238_s14 = scalar_lea.vmem %s1491_s1, %s773_s29 }
  0x2e   : > { %v272_v0 = vld [vmem:[%s238_s14] sm:$0xff]  ;;  %v274_v1 = vld [vmem:[%s238_s14 + $0x10] sm:$0xff] }
  0x2f   : > { %v276_v2 = vld [vmem:[%s238_s14 + $0x20] sm:$0xff]  ;;  %273 = vst [vmem:[%s236_s30] sm:$0xff] %v272_v0  ;;  %275 = vst [vmem:[%s236_s30 + $0x8] sm:$0xff] %v274_v1  ;;  %v278_v3 = vld [vmem:[%s238_s14 + $0x30] sm:$0xff] }
  0x30   : > { %277 = vst [vmem:[%s236_s30 + $0x10] sm:$0xff] %v276_v2  ;;  %279 = vst [vmem:[%s236_s30 + $0x18] sm:$0xff] %v278_v3 }
  0x31 PF: > { %s292_s7 = sand.u32 1, %s1142_s23   ;;  %s794_s6 = sshll.u32 %s1154_s26, 11 }
  0x32   : > { %s774_s21 = sshll.u32 %s292_s7, 7  ;;  %s1312_s29 = scalar_lea.hbm %s1475_s3, %s794_s6 }
  0x33   : > { %s296_s8 = scalar_lea.vmem [#allocation4], %s774_s21  ;;  %s1316_s13 = scalar_lea.sflag [#allocation5], %s292_s7 }
  0x34   : > { %s304_s9 = sshll.u32 %s296_s8, 4  ;;  %s1012_s14 = scalar_lea.hbm %s1312_s29, 2048  ;;  %s1314_s9 = int_to_ptr.vmem [resolvable:$true] %s304_s9 }
  0x35   : > { %p1013_p4 = scmp.ne.s32.totalorder %s1312_s29, %s1012_s14  ;;  %s1016_s27 = scalar_lea.hbm %s1475_s3, 4096 }
  0x36   : > { %p1017_p7 = scmp.lt.u32.totalorder %s1312_s29, %s1475_s3  ;;  %p1018_p9 = scmp.lt.u32.totalorder %s1016_s27, %s1012_s14 }
  0x37   : > { %p1014_p5 = pnand %p1013_p4, %p1267_p3  ;;  %p1020_p11 = scmp.lt.u32.totalorder %s1012_s14, %s1312_s29 }
  0x38   : > { %p1019_p10 = por %p1018_p9, %p1017_p7 }
  0x39   : > { %p1015_p6 = pneg %p1014_p5 }
  0x3a   : > { %p1021_p13 = por %p1020_p11, %p1019_p10 }
  0x3c   : > { %p1022_p0 = pnand %p1021_p13, %p1015_p6 }
  0x3e   : > { %1025 = shalt.err (!%p1022_p0)
}
  0x3f   : > { %s1026_s7 = scalar_lea.vmem %s1314_s9, 2048  ;;  %s1164_s1 = smov [#allocation4]  }
  0x40   : > { %p1027_p2 = scmp.ne.s32.totalorder %s1314_s9, %s1026_s7  ;;  %s1030_s21 = sshll.u32 %s1164_s1, 4  ;;  %s1031_s21 = int_to_ptr.vmem [resolvable:$false] %s1030_s21 }
  0x41   : > { %s1032_s8 = scalar_lea.vmem %s1031_s21, 4096  ;;  %p1033_p1 = scmp.lt.s32.totalorder %s1314_s9, %s1031_s21 }
  0x42   : > { %p1028_p4 = pnand %p1027_p2, %p1267_p3  ;;  %p1034_p12 = scmp.lt.s32.totalorder %s1032_s8, %s1026_s7 }
  0x44   : > { %p1029_p5 = pneg %p1028_p4  ;;  %p1035_p7 = por %p1034_p12, %p1033_p1 }
  0x46   : > { %p1036_p9 = pnand %p1035_p7, %p1029_p5 }
  0x48   : > { %1039 = shalt.err (!%p1036_p9)
}
  0x49   : > { %s1165_s14 = smov 128   ;;  %s1166_s30 = smov 8  }
  0x4a   : > { %906 = dma.hbm_to_vmem [thread:$0]  (%p1267_p3), %s1312_s29, 2048, %s1314_s9, %s1316_s13, %s1165_s14, %s1165_s14, %s1166_s30  }
  0x4b PF: > { %p777_p6 = scmp.ge.s32.totalorder %s1162_s28, 1  ;;  %p312_p10 = scmp.lt.s32.totalorder %s1162_s28, 7 }
  0x4d   : > { %p313_p11 = pnand %p777_p6, %p312_p10 }
  0x4e   : > { %s319_s27 = sand.u32 (!%p313_p11), 1, %s1138_s22  }
  0x4f   : > { %316 = sbr.rel (%p313_p11) target bundleno = 595 (0x253), region = 74  ;;  %s778_s6 = sshll.u32 (!%p313_p11), %s319_s27, 5 }
  0x50   : > { %s779_s11 = sshll.u32 (!%p313_p11), %s319_s27, 7  ;;  %s321_s7 = scalar_lea.vmem (!%p313_p11), [#allocation3], %s778_s6 }
  0x51   : > { %s326_s1 = scalar_lea.sflag (!%p313_p11), [#allocation5], %s319_s27  ;;  %s1343_s21 = scalar_lea.vmem (!%p313_p11), [#allocation4], %s779_s11 }
  0x56   : > { %1113 = dma.done.wait (%p1277_p8), %s326_s1, 2048  }
  0x57   : > { %1115 = vsyncadd (%p1277_p8), %s326_s1, 4294965248  ;;  %s368_s10 = sand.u32 1, %s1126_s19   ;;  %s781_s29 = sshll.u32 %s1150_s25, 1 }
  0x58   : > { %s780_s9 = sshll.u32 %s368_s10, 4  ;;  %p372_p3 = scmp.lt.s32.totalorder %s781_s29, 5 }
  0x59   : > { %p377_p12 = scmp.lt.s32.totalorder %s1146_s24, 1  ;;  %s1366_s1 = scalar_lea.vmem [#allocation7], %s780_s9 }
  0x5a   : > { %s1513_s29 = smov (!%p372_p3, %s781_s29), 5  ;;  %p783_p8 = scmp.ne.s32.totalorder %s1146_s24, 0 }
  0x5b   : > { %s1355_s13 = scalar_select %p377_p12, %s1146_s24, 1 }
  0x5c   : > { %s782_s8 = sshll.u32 %s1513_s29, 3  ;;  %388 = sbr.rel (%p783_p8) target bundleno = 99 (0x63), region = 86  ;;  %v1167_v4 = vmov (!%p783_p8), 0.0  }
  0x5d   : > { %s1360_s12 = scalar_lea.vmem %s1472_s0, %s782_s8  ;;  %s379_s11 = scalar_lea.vmem %s1474_s2, %s1355_s13  ;;  %389 = vst [vmem:[#allocation2] sm:$0xff] (!%p783_p8), %v1167_v4  ;;  %390 = vst [vmem:[#allocation2 + $0x8] sm:$0xff] (!%p783_p8), %v1167_v4 }
  0x63 PF: > { %v393_v5 = vld [vmem:[%s321_s7] sm:$0xff]  ;;  %v394_v6 = vld [vmem:[%s321_s7 + $0x8] sm:$0xff]  ;;  %v395_v7 = vld [vmem:[%s321_s7 + $0x10] sm:$0xff]  ;;  %vm404_vm0 = vcmask 261120   ;;  %p787_p1 = scmp.ne.s32.totalorder %s1146_s24, 1 }
  0x64   : > { %v866_v8 = vpack.c.bf16 %v394_v6, %v393_v5  ;;  %v396_v9 = vld [vmem:[%s321_s7 + $0x18] sm:$0xff]  ;;  %v391_v10 = vld [vmem:[%s1360_s12] sm:$0xff]  ;;  %v498_v12 = vld [vmem:[%s1343_s21] sm:$0xff] }
  0x65   : > { %v870_v11 = vpack.c.bf16 %v396_v9, %v395_v7  ;;  %828 = vmatprep.mubr.msk.f32.mxu0 %vm404_vm0, %v391_v10  ;;  %v499_v13 = vld [vmem:[%s1343_s21 + $0x8] sm:$0xff]  ;;  %v500_v14 = vld [vmem:[%s1343_s21 + $0x10] sm:$0xff]  ;;  %v501_v16 = vld [vmem:[%s1343_s21 + $0x18] sm:$0xff] }
  0x66   : > { %867 = vmatprep.subr.bf16.mxu0 %v866_v8  ;;  %v874_v15 = vpack.c.bf16 %v499_v13, %v498_v12  ;;  %v878_v17 = vpack.c.bf16 %v501_v16, %v500_v14  ;;  %v502_v18 = vld [vmem:[%s1343_s21 + $0x20] sm:$0xff]  ;;  %v503_v19 = vld [vmem:[%s1343_s21 + $0x28] sm:$0xff]  ;;  %v392_v21 = vld [vmem:[%s1360_s12 + $0x8] sm:$0xff] }
  0x67   : > { %869 = vmatpush3.bf16.msra.mxu0 %v866_v8  ;;  %v882_v20 = vpack.c.bf16 %v503_v19, %v502_v18  ;;  %v504_v22 = vld [vmem:[%s1343_s21 + $0x30] sm:$0xff]  ;;  %v505_v23 = vld [vmem:[%s1343_s21 + $0x38] sm:$0xff]  ;;  %v506_v25 = vld [vmem:[%s1343_s21 + $0x40] sm:$0xff] }
  0x68   : > { %871 = vmatprep.subr.bf16.mxu0 %v870_v11  ;;  %875 = vmatprep.subr.bf16.mxu1 %v874_v15  ;;  %v886_v24 = vpack.c.bf16 %v505_v23, %v504_v22  ;;  %v507_v26 = vld [vmem:[%s1343_s21 + $0x48] sm:$0xff]  ;;  %v508_v28 = vld [vmem:[%s1343_s21 + $0x50] sm:$0xff]  ;;  %v509_v29 = vld [vmem:[%s1343_s21 + $0x58] sm:$0xff] }
  0x69   : > { %877 = vmatpush3.bf16.msra.mxu1 %v874_v15  ;;  %v890_v27 = vpack.c.bf16 %v507_v26, %v506_v25  ;;  %v894_v30 = vpack.c.bf16 %v509_v29, %v508_v28  ;;  %v510_v31 = vld [vmem:[%s1343_s21 + $0x60] sm:$0xff]  ;;  %v511_v32 = vld [vmem:[%s1343_s21 + $0x68] sm:$0xff]  ;;  %v512_v34 = vld [vmem:[%s1343_s21 + $0x70] sm:$0xff] }
  0x6a   : > { %879 = vmatprep.subr.bf16.mxu1 %v878_v17  ;;  %v898_v33 = vpack.c.bf16 %v511_v32, %v510_v31  ;;  %v513_v35 = vld [vmem:[%s1343_s21 + $0x78] sm:$0xff]  ;;  %v784_v37 = vld [vmem:[%s379_s11] ss:$0 sm:$0xff] }
  0x6b   : > { %873 = vmatpush3.bf16.msra.mxu0 %v870_v11  ;;  %v902_v36 = vpack.c.bf16 %v513_v35, %v512_v34  ;;  %v497_v52 = vld [vmem:[#allocation2 + $0x8] sm:$0xff]  ;;  %v496_v53 = vld [vmem:[#allocation2] sm:$0xff] }
  0x6c   : > { %v788_v59 = vld [vmem:[%s1476_s4] ss:$0 sm:$0xff] (!%p787_p1) }
  0x6d   : > { %881 = vmatpush3.bf16.msra.mxu1 %v878_v17 }
  0x6e   : > { %829 = vmatmul.mubr.msk.f32.vlgmr.msra.gmra.mrb[0].mxu0 %vm404_vm0, %v392_v21  ;;  %883 = vmatprep.subr.bf16.mxu1 %v882_v20 }
  0x71   : > { %885 = vmatpush3.bf16.msra.mxu1 %v882_v20 }
  0x72   : > { %887 = vmatprep.subr.bf16.mxu1 %v886_v24 }
  0x75   : > { %889 = vmatpush3.bf16.msra.mxu1 %v886_v24 }
  0x76   : > { %891 = vmatprep.subr.bf16.mxu1 %v890_v27 }
  0x79   : > { %893 = vmatpush3.bf16.msra.mxu1 %v890_v27 }
  0x7a   : > { %895 = vmatprep.subr.bf16.mxu1 %v894_v30 }
  0x7d   : > { %897 = vmatpush3.bf16.msra.mxu1 %v894_v30 }
  0x7e   : > { %899 = vmatprep.subr.bf16.mxu1 %v898_v33 }
  0x81   : > { %901 = vmatpush3.bf16.msra.mxu1 %v898_v33 }
  0x82   : > { %903 = vmatprep.subr.bf16.mxu1 %v902_v36 }
  0x85   : > { %905 = vmatpush3.bf16.msra.mxu1 %v902_v36 }
 0x141   : > { %v830_v38 = vpop.f32.mrb[0].mxu0 }
 0x142   : > { %v483_v39 = vadd.f32 %v830_v38, %v784_v37  ;;  %v477_v40 = vpop.f32.mrb[1].mxu0 }
 0x143   : > { %v478_v41 = vadd.f32 %v784_v37, %v477_v40 }
 0x144   : > { %v489_v42 = vmul.f32 0.70710677, %v483_v39  ;;  %v487_v49 = vmul.f32 0.5, %v483_v39 }
 0x145   : > { %v488_v43 = vmul.f32 0.70710677, %v478_v41  ;;  %v486_v47 = vmul.f32 0.5, %v478_v41 }
 0x146   : > { %1008 = verf.f32 %v489_v42 }
 0x147   : > { %1010 = verf.f32 %v488_v43 }
 0x150   : > { %v1009_v44 = vpop.eup %1008 }
 0x151   : > { %v1011_v45 = vpop.eup %1010  ;;  %v493_v46 = vadd.f32 1.0, %v1009_v44 }
 0x152   : > { %v492_v48 = vadd.f32 1.0, %v1011_v45 }
 0x153   : > { %v495_v51 = vmul.f32 %v493_v46, %v487_v49 }
 0x154   : > { %v494_v50 = vmul.f32 %v492_v48, %v486_v47 }
 0x156   : > { %863 = vmatprep.mubr.f32.mxu1 %v494_v50 }
 0x157   : > { %864 = vmatmul.mubr.f32.vlgmr.msra.gmra.mrb[0].mxu1 %v495_v51 }
 0x228   : > { %596 = sbr.rel (%p787_p1) target bundleno = 569 (0x239), region = 90 }
 0x22a   : > { %v865_v54 = vpop.f32.mrb[0].mxu1 }
 0x22b   : > { %v590_v55 = vadd.f32 %v865_v54, %v497_v52  ;;  %v580_v56 = vpop.f32.mrb[1].mxu1 }
 0x22c   : > { %v589_v57 = vadd.f32 %v580_v56, %v496_v53 }
 0x22d   : > { %592 = vst [vmem:[#allocation2 + $0x8] sm:$0xff] %v590_v55 }
 0x22e   : > { %591 = vst [vmem:[#allocation2] sm:$0xff] %v589_v57 }
 0x234   : > { %v598_v60 = vld [vmem:[#allocation2 + $0x8] sm:$0xff] }
 0x235   : > { %v597_v58 = vld [vmem:[#allocation2] sm:$0xff]  ;;  %v607_v62 = vadd.f32 %v788_v59, %v598_v60 }
 0x236   : > { %v606_v61 = vadd.f32 %v788_v59, %v597_v58 }
 0x237   : > { %609 = vst [vmem:[%s1366_s1 + $0x8] sm:$0xff] %v607_v62 }
 0x238   : > { %608 = vst [vmem:[%s1366_s1] sm:$0xff] %v606_v61 }
 0x239 PF: > { %s795_s13 = sshll.u32 %s1150_s25, 8  ;;  %s625_s30 = sshll.u32 %s1366_s1, 4  ;;  %s1407_s30 = int_to_ptr.vmem [resolvable:$true] %s625_s30 }
 0x23a   : > { %s1404_s14 = scalar_lea.hbm %s1477_s5, %s795_s13  ;;  %s1411_s12 = scalar_lea.sflag [#allocation6], %s368_s10 }
 0x23b   : > { %s1040_s27 = scalar_lea.vmem %s1407_s30, 256  ;;  %p1492_p0 = scmp.ne.s32.totalorder %s1489_s16, 0 }
 0x23c   : > { %p1041_p13 = scmp.ne.s32.totalorder %s1407_s30, %s1040_s27  ;;  %s1168_s25 = smov [#allocation7]  }
 0x23d   : > { %s1044_s6 = sshll.u32 %s1168_s25, 4  ;;  %s1045_s6 = int_to_ptr.vmem [resolvable:$false] %s1044_s6 }
 0x23e   : > { %p1042_p2 = pnand %p1041_p13, %p1492_p0  ;;  %s1046_s11 = scalar_lea.vmem %s1045_s6, 512 }
 0x23f   : > { %p1047_p5 = scmp.lt.s32.totalorder %s1407_s30, %s1045_s6  ;;  %p1048_p7 = scmp.lt.s32.totalorder %s1046_s11, %s1040_s27 }
 0x240   : > { %p1043_p4 = pneg %p1042_p2 }
 0x241   : > { %p1049_p9 = por %p1048_p7, %p1047_p5 }
 0x243   : > { %p1050_p6 = pnand %p1049_p9, %p1043_p4 }
 0x245   : > { %1053 = shalt.err (!%p1050_p6)
}
 0x246   : > { %s1054_s10 = scalar_lea.hbm %s1404_s14, 256  ;;  %s1058_s29 = scalar_lea.hbm %s1477_s5, 768 }
 0x247   : > { %p1055_p10 = scmp.ne.s32.totalorder %s1404_s14, %s1054_s10  ;;  %p1059_p12 = scmp.lt.u32.totalorder %s1404_s14, %s1477_s5 }
 0x248   : > { %p1060_p8 = scmp.lt.u32.totalorder %s1058_s29, %s1054_s10  ;;  %p1062_p13 = scmp.lt.u32.totalorder %s1054_s10, %s1404_s14 }
 0x249   : > { %p1056_p11 = pnand %p1055_p10, %p1492_p0 }
 0x24a   : > { %p1061_p1 = por %p1060_p8, %p1059_p12 }
 0x24b   : > { %p1057_p3 = pneg %p1056_p11 }
 0x24c   : > { %p1063_p2 = por %p1062_p13, %p1061_p1 }
 0x24e   : > { %p1064_p4 = pnand %p1063_p2, %p1057_p3 }
 0x250   : > { %1067 = shalt.err (!%p1064_p4)
}
 0x251   : > { %s1169_s13 = smov 128   ;;  %s1170_s24 = smov 8  }
 0x252   : > { %908 = dma.vmem_to_hbm [thread:$0]  (%p1492_p0), %s1407_s30, 256, %s1404_s14, %s1411_s12, %s1169_s13, %s1169_s13, %s1170_s24  }
 0x253 PF: > { %p914_p5 = scmp.ge.s32.totalorder %s1162_s28, 2  ;;  %s640_s8 = sand.u32 1, %s1122_s18  }
 0x254   : > { %p1493_p7 = scmp.ne.s32.totalorder %s1490_s17, 0  ;;  %s641_s27 = scalar_lea.sflag [#allocation6], %s640_s8 }
 0x256   : > { %p911_p9 = pnand %p914_p5, %p1493_p7 }
 0x258   : > { %1117 = dma.done.wait (!%p911_p9), %s641_s27, 256  }
 0x259   : > { %1119 = vsyncadd (!%p911_p9), %s641_s27, 4294967040  ;;  %s21_s28 = sadd.s32 1, %s1162_s28   ;;  %s1494_s16 = sld [smem:[#allocation13_spill]] }
 0x25a   : > { %p18_p6 = scmp.ge.s32.totalorder %s21_s28, 8   ;;  %s1495_s25 = sld [smem:[#allocation10_spill]] }
 0x25b   : > { %s1496_s14 = sld [smem:[#allocation11_spill]]  ;;  %s1497_s27 = sld [smem:[#allocation12_spill]] }
 0x25c   : > { %s1498_s18 = smov %s1126_s19  ;;  %s1499_s19 = smov %s1130_s20 }
 0x25d   : > { %s1500_s20 = smov %s1287_s15  ;;  %s1501_s21 = smov %s1138_s22 }
 0x25e   : > { %s1502_s22 = smov %s1142_s23  ;;  %s1504_s24 = smov %s1154_s26 }
 0x25f   : > { %s1503_s23 = smov %s1494_s16  ;;  %20 = sbr.rel (!%p18_p6) target bundleno = 11 (0xb), region = 148 }
 0x261   : > { %s1505_s26 = smov %s1496_s14 }
 0x266   :  { %646 = vsyncpa [#allocation5], 1 }
 0x267   :  { %648 = vsyncpa [#allocation5 + $0x1], 1 }
 0x268   :  { %649 = vsyncpa [#allocation6], 1 }
 0x269   :  { %651 = vsyncpa [#allocation6 + $0x1], 1 }

</bundles_post_ra>
